<compile_context>
chip_gen: v6e
topology: v6e:2x2x1
jax: 0.10.0
libtpu: 0.0.40
codegen_flags: <defaults>
</compile_context>

<pallas_src>
import functools

import jax
import jax.numpy as jnp
import numpy as np
from jax.experimental import pallas as pl
from jax.experimental.pallas import tpu as pltpu


def _attention_head_kernel(x_ref, wqkv_ref, bqkv_ref, o_ref, *, scale):
    # x_ref    : (TB, S, D)   activations for TB batch elements
    # wqkv_ref : (D, 3H)      fused [Wq | Wk | Wv], transposed to MXU layout
    # bqkv_ref : (1, 3H)      fused biases
    # o_ref    : (TB, S, H)   per-head attention output
    TB, S, D = x_ref.shape
    H = wqkv_ref.shape[1] // 3

    # Fold batch into rows for the fused 2-D projection matmul (layout-safe:
    # only leading dims are merged, lane dim D is untouched).  Native dtype in,
    # f32 accumulation via preferred_element_type.
    x2 = x_ref[...].reshape(TB * S, D)
    qkv = (jnp.dot(x2, wqkv_ref[...], preferred_element_type=jnp.float32)
           + bqkv_ref[...])                       # (TB*S, 3H), f32

    q = qkv[:, 0 * H:1 * H].reshape(TB, S, H)
    k = qkv[:, 1 * H:2 * H].reshape(TB, S, H)
    v = qkv[:, 2 * H:3 * H].reshape(TB, S, H)

    # Scaled dot-product attention, softmax over keys (numerically stable).
    s = jnp.einsum('bqh,bkh->bqk', q, k,
                   preferred_element_type=jnp.float32) * scale
    s = s - jnp.max(s, axis=-1, keepdims=True)
    p = jnp.exp(s)
    attn = p * pl.reciprocal(jnp.sum(p, axis=-1, keepdims=True), approx=True)

    # TODO(synk): nn.Dropout(0.2) is identity in eval mode; training-mode
    # dropout would use pltpu.prng_seed / pltpu.prng_random_bits here.

    out = jnp.einsum('bqk,bkh->bqh', attn, v,
                     preferred_element_type=jnp.float32)
    o_ref[...] = out.astype(o_ref.dtype)


def _pick_block_b(B, S, D, H, dtype_bytes=4,
                  vmem_budget_bytes=8 << 20, min_grid_steps=2):
    """Batch rows per grid step under a conservative VMEM budget.

    Peak per-batch-element VMEM (f32 unless noted):
      * x tile (input dtype), double-buffered by the pipeline
      * o tile (output dtype), double-buffered
      * x2 reshape copy (upper-bounded at 4 B/elem)
      * fused qkv projection + the q/k/v slices  (4 * S * 3H effectively)
      * s, p, attn: three live (S, S) score buffers
      * attn @ V result before the output cast
    Resident weights/biases (D*3H + 3H, double-buffered) are constant and tiny
    at these shapes, so they are not charged per element.

    The 8 MiB default stays inside every chip's default scoped-VMEM limit
    (v5e: 16 MiB, v6e/v7x: 32 MiB).  Raise it together with
    pltpu.CompilerParams(vmem_limit_bytes=...) for larger shapes; on v7x keep
    the total under ~half of its 64 MiB physical VMEM.
    """
    per_b = (2 * S * D * dtype_bytes          # x tile, double-buffered
             + 2 * S * H * dtype_bytes        # o tile, double-buffered
             + S * D * 4                      # x2 reshape copy
             + 4 * S * (3 * H) * 4            # qkv + q/k/v f32
             + 3 * S * S * 4                  # s, p, attn live score buffers
             + S * H * 4)                     # attn @ V f32 result
    tb = max(1, min(B, vmem_budget_bytes // max(per_b, 1)))
    # Keep >= 2 grid steps when the batch allows: dimension_semantics only
    # shards grid steps, and v7x has 2 TensorCores per chip.  On single-TC
    # v5e/v6e this costs one extra ~0.35 us step, which is negligible.
    if B >= min_grid_steps:
        tb = min(tb, B // min_grid_steps)
    tb = max(tb, 1)
    while B % tb:            # keep the grid exact (no ragged last step)
        tb -= 1
    return tb


def attention_head_forward(x, wq, bq, wk, bk, wv, bv, *, block_b=None):
    """Single-head attention forward.

    x          : (B, S, D)
    wq/wk/wv   : (H, D)   PyTorch nn.Linear layout (out_features, in_features)
    bq/bk/bv   : (H,)
    returns    : (B, S, H)
    """
    B, S, D = x.shape
    H = wq.shape[0]
    assert wq.shape == wk.shape == wv.shape == (H, D)
    assert bq.shape == bk.shape == bv.shape == (H,)

    if block_b is None:
        block_b = _pick_block_b(B, S, D, H, dtype_bytes=x.dtype.itemsize)
    assert B % block_b == 0
    grid = (B // block_b,)

    # Fuse the three projections ONCE on the wrapper side into a single
    # lane-dense (D, 3H) weight and a (1, 3H) bias (MXU-friendly layout).
    wqkv = jnp.concatenate([wq.T, wk.T, wv.T], axis=1)       # (D, 3H)
    bqkv = jnp.concatenate([bq, bk, bv]).reshape(1, 3 * H)   # (1, 3H)

    kernel = functools.partial(_attention_head_kernel,
                               scale=float(1.0 / (H ** 0.5)))

    return pl.pallas_call(
        kernel,
        out_shape=jax.ShapeDtypeStruct((B, S, H), x.dtype),
        grid_spec=pltpu.PrefetchScalarGridSpec(
            num_scalar_prefetch=0,
            grid=grid,
            in_specs=[
                # x streams per grid step (block_b batch elements at a time).
                pl.BlockSpec((block_b, S, D), lambda b: (b, 0, 0)),
                # Fused weight / bias: constant block index -> fetched once,
                # held resident, not re-DMA'd every step.
                pl.BlockSpec((D, 3 * H), lambda b: (0, 0)),
                pl.BlockSpec((1, 3 * H), lambda b: (0, 0)),
            ],
            out_specs=pl.BlockSpec((block_b, S, H), lambda b: (b, 0, 0)),
        ),
        compiler_params=pltpu.CompilerParams(
            dimension_semantics=("parallel",),   # shard batch over cores
        ),
    )(x, wqkv, bqkv)


def _reference(x, wq, bq, wk, bk, wv, bv):
    H = wq.shape[0]
    q = jnp.einsum('bsd,hd->bsh', x, wq) + bq
    k = jnp.einsum('bsd,hd->bsh', x, wk) + bk
    v = jnp.einsum('bsd,hd->bsh', x, wv) + bv
    s = jnp.einsum('bqh,bkh->bqk', q, k) / (H ** 0.5)
    a = jax.nn.softmax(s, axis=-1)
    return jnp.einsum('bqk,bkh->bqh', a, v)


if __name__ == "__main__":
    # d_model=32, head_size=16, batch=2, seq=8 (dropout is identity in eval).
    B, S, D, H = 2, 8, 32, 16

    key = jax.random.PRNGKey(0)
    kx, kq, kk, kv, kbq, kbk, kbv = jax.random.split(key, 7)

    x = jax.random.normal(kx, (B, S, D), dtype=jnp.float32)
    # PyTorch nn.Linear layout: weight (out_features, in_features), bias (out,)
    wq = jax.random.normal(kq, (H, D), dtype=jnp.float32) * 0.1
    wk = jax.random.normal(kk, (H, D), dtype=jnp.float32) * 0.1
    wv = jax.random.normal(kv, (H, D), dtype=jnp.float32) * 0.1
    bq = jax.random.normal(kbq, (H,), dtype=jnp.float32) * 0.1
    bk = jax.random.normal(kbk, (H,), dtype=jnp.float32) * 0.1
    bv = jax.random.normal(kbv, (H,), dtype=jnp.float32) * 0.1

    out = attention_head_forward(x, wq, bq, wk, bk, wv, bv)
    out = jax.block_until_ready(out)
    assert out.shape == (B, S, H)

    ref = _reference(x, wq, bq, wk, bk, wv, bv)
    np.testing.assert_allclose(np.asarray(out), np.asarray(ref),
                               rtol=2e-2, atol=2e-2)  # MXU / vrcp headroom

    print("KERNEL_OK")
</pallas_src>

<mosaic_0001>
module attributes {stable_mosaic.version = 11 : i64} {
  func.func @_attention_head_kernel(%arg0: i32, %arg1: memref<1x8x32xf32, #tpu.memory_space<vmem>>, %arg2: memref<32x48xf32, #tpu.memory_space<vmem>>, %arg3: memref<1x48xf32, #tpu.memory_space<vmem>>, %arg4: memref<1x8x16xf32, #tpu.memory_space<vmem>>) attributes {dimension_semantics = [#tpu.dimension_semantics<parallel>], iteration_bounds = array<i64: 2>, scalar_prefetch = 0 : i64, scratch_operands = 0 : i64, tpu.core_type = #tpu.core_type<tc>, window_params = [{transform_indices = @transform_0, window_bounds = array<i64: 1, 8, 32>}, {pipeline_mode = #tpu.pipeline_mode<synchronous>, transform_indices = @transform_1, window_bounds = array<i64: 32, 48>}, {pipeline_mode = #tpu.pipeline_mode<synchronous>, transform_indices = @transform_2, window_bounds = array<i64: 1, 48>}, {transform_indices = @transform_3, window_bounds = array<i64: 1, 8, 16>}]} {
    %c0 = arith.constant 0 : index
    %c0_0 = arith.constant 0 : index
    %c0_1 = arith.constant 0 : index
    %0 = vector.load %arg1[%c0, %c0_0, %c0_1] : memref<1x8x32xf32, #tpu.memory_space<vmem>>, vector<1x8x32xf32>
    %1 = vector.shape_cast %0 : vector<1x8x32xf32> to vector<8x32xf32>
    %c0_2 = arith.constant 0 : index
    %c0_3 = arith.constant 0 : index
    %2 = vector.load %arg2[%c0_2, %c0_3] : memref<32x48xf32, #tpu.memory_space<vmem>>, vector<32x48xf32>
    %cst = arith.constant dense<0.000000e+00> : vector<8x48xf32>
    %3 = tpu.matmul %1, %2, %cst {dimension_numbers = #tpu.dot_dimension_numbers<[1], [0], [0], [1], [0, 0, 1, 1], [], []>} : vector<8x32xf32>, vector<32x48xf32>, vector<8x48xf32> -> vector<8x48xf32>
    %c0_4 = arith.constant 0 : index
    %c0_5 = arith.constant 0 : index
    %4 = vector.load %arg3[%c0_4, %c0_5] : memref<1x48xf32, #tpu.memory_space<vmem>>, vector<1x48xf32>
    %5 = vector.broadcast %4 : vector<1x48xf32> to vector<8x48xf32>
    %6 = arith.addf %3, %5 : vector<8x48xf32>
    %7 = vector.extract_strided_slice %6 {offsets = [0, 0], sizes = [8, 16], strides = [1, 1]} : vector<8x48xf32> to vector<8x16xf32>
    %8 = vector.shape_cast %7 : vector<8x16xf32> to vector<1x8x16xf32>
    %9 = vector.extract_strided_slice %6 {offsets = [0, 16], sizes = [8, 16], strides = [1, 1]} : vector<8x48xf32> to vector<8x16xf32>
    %10 = vector.shape_cast %9 : vector<8x16xf32> to vector<1x8x16xf32>
    %11 = vector.extract_strided_slice %6 {offsets = [0, 32], sizes = [8, 16], strides = [1, 1]} : vector<8x48xf32> to vector<8x16xf32>
    %12 = vector.shape_cast %11 : vector<8x16xf32> to vector<1x8x16xf32>
    "tpu.trace_start"() <{level = 10 : i32, message = "bqh,bkh->bqk"}> : () -> ()
    %cst_6 = arith.constant dense<0.000000e+00> : vector<1x8x8xf32>
    %13 = tpu.matmul %8, %10, %cst_6 {dimension_numbers = #tpu.dot_dimension_numbers<[2], [2], [1], [1], [0, 0, 0, 1, 1, 1], [0], [0]>} : vector<1x8x16xf32>, vector<1x8x16xf32>, vector<1x8x8xf32> -> vector<1x8x8xf32>
    "tpu.trace_stop"() : () -> ()
    %cst_7 = arith.constant 2.500000e-01 : f32
    %14 = vector.broadcast %cst_7 : f32 to vector<1x8x8xf32>
    %15 = arith.mulf %13, %14 : vector<1x8x8xf32>
    %cst_8 = arith.constant dense<0xFF800000> : vector<1x8xf32>
    %16 = vector.multi_reduction <maximumf>, %15, %cst_8 [2] : vector<1x8x8xf32> to vector<1x8xf32>
    %17 = vector.shape_cast %16 : vector<1x8xf32> to vector<1x8x1xf32>
    %18 = vector.broadcast %17 : vector<1x8x1xf32> to vector<1x8x8xf32>
    %19 = arith.subf %15, %18 : vector<1x8x8xf32>
    %20 = math.exp %19 : vector<1x8x8xf32>
    %cst_9 = arith.constant dense<0.000000e+00> : vector<1x8xf32>
    %21 = vector.multi_reduction <add>, %20, %cst_9 [2] : vector<1x8x8xf32> to vector<1x8xf32>
    %22 = vector.shape_cast %21 : vector<1x8xf32> to vector<1x8x1xf32>
    %23 = tpu.reciprocal %22 {approx = true} : vector<1x8x1xf32> -> vector<1x8x1xf32>
    %24 = vector.broadcast %23 : vector<1x8x1xf32> to vector<1x8x8xf32>
    %25 = arith.mulf %20, %24 : vector<1x8x8xf32>
    "tpu.trace_start"() <{level = 10 : i32, message = "bqk,bkh->bqh"}> : () -> ()
    %cst_10 = arith.constant dense<0.000000e+00> : vector<1x8x16xf32>
    %26 = tpu.matmul %25, %12, %cst_10 {dimension_numbers = #tpu.dot_dimension_numbers<[2], [1], [1], [2], [0, 0, 0, 1, 1, 2], [0], [0]>} : vector<1x8x8xf32>, vector<1x8x16xf32>, vector<1x8x16xf32> -> vector<1x8x16xf32>
    "tpu.trace_stop"() : () -> ()
    %c0_11 = arith.constant 0 : index
    %c0_12 = arith.constant 0 : index
    %c0_13 = arith.constant 0 : index
    %27 = vector.load %arg4[%c0_11, %c0_12, %c0_13] : memref<1x8x16xf32, #tpu.memory_space<vmem>>, vector<1x8x16xf32>
    tpu.vector_store %arg4[%c0_11, %c0_12, %c0_13], %26 {strides = array<i32>} : memref<1x8x16xf32, #tpu.memory_space<vmem>>, vector<1x8x16xf32>,
    return
  }
  func.func @transform_0(%arg0: i32) -> (i32, i32, i32) {
    %c0_i32 = arith.constant 0 : i32
    %c0_i32_0 = arith.constant 0 : i32
    %c0_i32_1 = arith.constant 0 : i32
    return %arg0, %c0_i32, %c0_i32_0 : i32, i32, i32
  }
  func.func @transform_1(%arg0: i32) -> (i32, i32) {
    %c0_i32 = arith.constant 0 : i32
    %c0_i32_0 = arith.constant 0 : i32
    %c0_i32_1 = arith.constant 0 : i32
    return %c0_i32, %c0_i32_0 : i32, i32
  }
  func.func @transform_2(%arg0: i32) -> (i32, i32) {
    %c0_i32 = arith.constant 0 : i32
    %c0_i32_0 = arith.constant 0 : i32
    %c0_i32_1 = arith.constant 0 : i32
    return %c0_i32, %c0_i32_0 : i32, i32
  }
  func.func @transform_3(%arg0: i32) -> (i32, i32, i32) {
    %c0_i32 = arith.constant 0 : i32
    %c0_i32_0 = arith.constant 0 : i32
    %c0_i32_1 = arith.constant 0 : i32
    return %arg0, %c0_i32, %c0_i32_0 : i32, i32, i32
  }
}

</mosaic_0001>

<bundles_post_ra>
// kernel: tpu_custom_call.1
= control target key start
LH: loop header
LB: loop body
LE: loop exit
PB: predicated region body
PF: predicated region fallthrough
CT: control target
= control target key end

     0   :  { %8 = vsyncpa [#allocation3], 0  ;;  %s1000_s0 = inlined_call_operand.hbm [shape: f32[2,8,32], index: 0, kind: input, shape index: {}]   ;;  %s1001_s1 = inlined_call_operand.hbm [shape: f32[32,48], index: 1, kind: input, shape index: {}]   ;;  %s1002_s2 = inlined_call_operand.vmem [shape: f32[1,48], index: 2, kind: input, shape index: {}]   ;;  %s1003_s3 = inlined_call_operand.hbm [shape: f32[2,8,16], index: 3, kind: output, shape index: {}]  }
   0x1   :  { %10 = vsyncpa [#allocation3 + $0x1], 0 }
   0x2   :  { %11 = vsyncpa [#allocation6], 0 }
   0x3   :  { %12 = vsyncpa [#allocation4], 0 }
   0x4   :  { %14 = vsyncpa [#allocation4 + $0x1], 0  ;;  %s818_s12 = smov 0   ;;  %s820_s13 = smov 0  }
   0x5   :  { %s822_s14 = smov 0   ;;  %s824_s15 = smov 0  }
   0x6 LB: > { %s839_s16 = sadd.s32 4294967295, %s787_s15   ;;  %s549_s17 = sadd.s32 4294967294, %s787_s15   ;;  %s787_s15 = sphi %s824_s15, %s1025_s15   ;;  %s783_s14 = sphi %s822_s14, %s1024_s14   ;;  %s779_s13 = sphi %s820_s13, %s1023_s13   ;;  %s775_s12 = sphi %s818_s12, %s1022_s12  }
   0x7   : > { %p40_p0 = scmp.ne.s32.totalorder %s779_s13, %s775_s12  ;;  %p1004_p1 = scmp.eq.s32.totalorder %s839_s16, 0 }
   0x8   : > { %p112_p3 = scmp.eq.s32.totalorder %s549_s17, 1  ;;  %p550_p5 = scmp.ge.s32.totalorder %s787_s15, 1 }
   0x9   : > { %p848_p4 = por %p1004_p1, %p40_p0  ;;  %p119_p7 = scmp.lt.s32.totalorder %s787_s15, 3 }
   0xa   : > { %p853_p6 = por %p112_p3, %p40_p0  ;;  %s789_s21 = smov [#allocation5]  }
   0xb   : > { %s1008_s18 = scalar_select %p848_p4, 1, 0 }
   0xc   : > { %s1009_s19 = scalar_select %p853_p6, 1, 0 }
   0xd   : > { %p858_p8 = pnand %p550_p5, %p119_p7  ;;  %s131_s22 = sshll.u32 %s789_s21, 4  ;;  %s132_s22 = int_to_ptr.vmem [resolvable:$true] %s131_s22 }
   0xe   : > { %s872_s24 = sadd.s32 1, %s787_s15   ;;  %s27_s25 = sadd.s32 1, %s783_s14 }
   0xf   : > { %s1010_s20 = scalar_select %p858_p8, 1, 0 }
  0x10   : > { %p606_p9 = pneg %p858_p8  ;;  %s24_s26 = ssub.s32 %s787_s15, %s872_s24 }
  0x11   : > { %s676_s27 = scalar_lea.vmem %s132_s22, 512  ;;  %p684_p5 = scmp.lt.s32.totalorder %s132_s22, %s132_s22 }
  0x12   : > { %p867_p11 = pnand %p606_p9, %p1004_p1  ;;  %p677_p13 = scmp.ne.s32.totalorder %s132_s22, %s676_s27 }
  0x13   : > { %p685_p7 = scmp.lt.s32.totalorder %s676_s27, %s676_s27 }
  0x14   : > { %p667_p12 = pneg %p867_p11 }
  0x15   : > { %p686_p10 = por %p685_p7, %p684_p5 }
  0x16   : > { %p679_p0 = pnand %p677_p13, %p667_p12 }
  0x18   : > { %p680_p3 = pneg %p679_p0 }
  0x1a   : > { %p687_p2 = pnand %p686_p10, %p680_p3 }
  0x1c   : > { %690 = shalt.err (!%p687_p2)
}
  0x1d   : > { %s790_s28 = smov 128   ;;  %s791_s29 = smov 8  }
  0x1e   : > { %609 = dma.hbm_to_vmem [thread:$0]  (!%p867_p11), %s1001_s1, 512, %s132_s22, [#allocation6], %s790_s28, %s790_s28, %s791_s29  }
  0x1f   : > { %p25_p9 = scmp.eq.s32.totalorder %s24_s26, 0  ;;  %p34_p12 = scmp.ne.s32.totalorder %s783_s14, %s779_s13 }
  0x20   : > { %p35_p10 = scmp.eq.s32.totalorder %s787_s15, 0  ;;  %p619_p2 = scmp.lt.s32.totalorder %s787_s15, 2 }
  0x21   : > { %s889_s5 = scalar_select %p25_p9, %s783_s14, %s27_s25  }
  0x22   : > { %p36_p13 = por %p35_p10, %p34_p12  ;;  %p1012_p0 = scmp.eq.s32.totalorder %s839_s16, 1 }
  0x23   : > { %s148_s7 = sand.u32 1, %s783_s14   ;;  %s554_s8 = sshll.u32 %s787_s15, 7 }
  0x24   : > { %p893_p3 = por %p1012_p0, %p34_p12  ;;  %s553_s9 = sshll.u32 %s148_s7, 3 }
  0x25   : > { %s902_s17 = scalar_lea.hbm %s1000_s0, %s554_s8  ;;  %s152_s21 = scalar_lea.vmem [#allocation2], %s553_s9 }
  0x26   : > { %s1013_s6 = scalar_select %p893_p3, 1, 0 }
  0x27   : > { %s159_s22 = sshll.u32 %s152_s21, 4  ;;  %p904_p11 = pnand %p619_p2, %p36_p13  ;;  %s160_s22 = int_to_ptr.vmem [resolvable:$true] %s159_s22 }
  0x28   : > { %s149_s25 = scalar_lea.sflag [#allocation3], %s148_s7  ;;  %s691_s26 = scalar_lea.hbm %s902_s17, 128 }
  0x29   : > { %p692_p5 = scmp.ne.s32.totalorder %s902_s17, %s691_s26  ;;  %p693_p7 = pneg %p904_p11 }
  0x2a   : > { %s696_s29 = scalar_lea.hbm %s1000_s0, 256  ;;  %p697_p10 = scmp.lt.s32.totalorder %s902_s17, %s1000_s0 }
  0x2b   : > { %p694_p9 = pnand %p693_p7, %p692_p5  ;;  %p698_p2 = scmp.lt.s32.totalorder %s696_s29, %s691_s26 }
  0x2d   : > { %p695_p12 = pneg %p694_p9  ;;  %p699_p13 = por %p698_p2, %p697_p10 }
  0x2f   : > { %p700_p0 = pnand %p699_p13, %p695_p12 }
  0x31   : > { %703 = shalt.err (!%p700_p0)
}
  0x32   : > { %s704_s8 = scalar_lea.vmem %s160_s22, 128  ;;  %s792_s7 = smov [#allocation2]  }
  0x33   : > { %p705_p1 = scmp.ne.s32.totalorder %s160_s22, %s704_s8  ;;  %s709_s9 = sshll.u32 %s792_s7, 4  ;;  %s710_s9 = int_to_ptr.vmem [resolvable:$false] %s709_s9 }
  0x34   : > { %s711_s10 = scalar_lea.vmem %s710_s9, 256  ;;  %p712_p5 = scmp.lt.s32.totalorder %s160_s22, %s710_s9 }
  0x35   : > { %p707_p6 = pnand %p705_p1, %p693_p7  ;;  %p713_p9 = scmp.lt.s32.totalorder %s711_s10, %s704_s8 }
  0x37   : > { %p708_p3 = pneg %p707_p6  ;;  %p714_p4 = por %p713_p9, %p712_p5 }
  0x39   : > { %p715_p8 = pnand %p714_p4, %p708_p3 }
  0x3b   : > { %718 = shalt.err (!%p715_p8)
}
  0x3c   : > { %613 = dma.hbm_to_vmem [thread:$0]  (!%p904_p11), %s902_s17, 128, %s160_s22, %s149_s25  }
  0x3d   : > { %p1015_p12 = scmp.ne.s32.totalorder %s1010_s20, 0 }
  0x3e   : > { %s925_s11 = sand.u32 (!%p1015_p12), 1, %s779_s13   ;;  %p1016_p1 = scmp.ne.s32.totalorder (!%p1015_p12), %s1008_s18, 0 }
  0x3f   : > { %168 = sbr.rel (%p1015_p12) target bundleno = 1109 (0x455), region = 32  ;;  %s556_s21 = sshll.u32 (!%p1015_p12), %s925_s11, 3 }
  0x40   : > { %s171_s26 = scalar_lea.sflag (!%p1015_p12), [#allocation3], %s925_s11  ;;  %s174_s27 = scalar_lea.vmem (!%p1015_p12), [#allocation2], %s556_s21 }
  0x44   : > { %762 = dma.done.wait (%p1016_p1), %s171_s26, 128  }
  0x45   : > { %764 = vsyncadd (%p1016_p1), %s171_s26, 4294967168  ;;  %p1017_p4 = scmp.eq.s32.totalorder %s839_s16, 0 }
  0x47   : > { %766 = dma.done.wait (%p1017_p4), [#allocation6], 512   ;;  %p1018_p6 = pmov %p1017_p4 }
  0x48   : > { %v793_v0 = vmov 0.0   ;;  %vm794_vm0 = vmmov 0   ;;  %v205_v1 = vld [vmem:[#allocation5 + $0x18] sm:$0xff]  ;;  %v204_v2 = vld [vmem:[#allocation5 + $0x10] sm:$0xff]  ;;  %v203_v3 = vld [vmem:[#allocation5 + $0x8] sm:$0xff]  ;;  %vm213_vm1 = vcmask 261120  }
  0x49   : > { %768 = vsyncadd (%p1018_p6), [#allocation6], 4294966784  ;;  %577 = vmatprep.subr.mxu0 %v793_v0  ;;  %585 = vmatprep.mubr.msk.f32.mxu0 %vm794_vm0, %v793_v0  ;;  %v202_v4 = vld [vmem:[#allocation5] sm:$0xff]  ;;  %v201_v5 = vld [vmem:[%s174_s27] sm:$0xff]  ;;  %s795_s17 = smov 112   ;;  %vm290_vm2 = vcmask 130048  }
  0x4a   : > { %588 = vmatprep.subr.mxu1 %v793_v0  ;;  %590 = vmatprep.mubr.msk.f32.mxu1 %vm794_vm0, %v793_v0  ;;  %v559_v6 = vld [vmem:[%s1002_s2] ss:$0 sm:$0xff]  ;;  %vm366_vm3 = vcmask 64512   ;;  %s796_s22 = smov 96   ;;  %s565_s23 = sshll.u32 %s839_s16, 7 }
  0x4b   : > { %578 = vmatpush3.msra.mxu0 %v205_v1  ;;  %s200_s25 = scalar_lea.vmem [#allocation7], %s556_s21  ;;  %s956_s4 = scalar_lea.hbm %s1003_s3, %s565_s23 }
  0x4c   : > { %579 = vmatprep.subr.mxu0 %v793_v0  ;;  %s469_s28 = sshll.u32 %s200_s25, 4  ;;  %s456_s8 = scalar_lea.sflag [#allocation4], %s925_s11  ;;  %s958_s28 = int_to_ptr.vmem [resolvable:$true] %s469_s28 }
  0x4d   : > { %580 = vmatpush3.msra.mxu0 %v204_v2  ;;  %s719_s7 = scalar_lea.vmem %s958_s28, 128  ;;  %p1019_p3 = scmp.ne.s32.totalorder %s1013_s6, 0 }
  0x4e   : > { %581 = vmatprep.subr.mxu0 %v793_v0  ;;  %p720_p8 = scmp.ne.s32.totalorder %s958_s28, %s719_s7  ;;  %s797_s16 = smov [#allocation7]  }
  0x4f   : > { %582 = vmatpush3.msra.mxu0 %v203_v3  ;;  %s723_s9 = sshll.u32 %s797_s16, 4  ;;  %s724_s9 = int_to_ptr.vmem [resolvable:$false] %s723_s9 }
  0x50   : > { %583 = vmatprep.subr.mxu0 %v793_v0  ;;  %p721_p11 = pnand %p720_p8, %p1019_p3  ;;  %s725_s10 = scalar_lea.vmem %s724_s9, 256 }
  0x51   : > { %584 = vmatpush3.msra.mxu0 %v202_v4  ;;  %p726_p10 = scmp.lt.s32.totalorder %s958_s28, %s724_s9  ;;  %p727_p2 = scmp.lt.s32.totalorder %s725_s10, %s719_s7 }
  0x52   : > { %586 = vmatmul.mubr.msk.f32.vlgmr.msra.gmra.mxu0 %vm213_vm1, %v201_v5  ;;  %p722_p7 = pneg %p721_p11 }
  0x53   : > { %p728_p13 = por %p727_p2, %p726_p10 }
  0x55   : > { %p729_p0 = pnand %p728_p13, %p722_p7 }
 0x112   : > { %v283_v7 = vpop.f32.mrf.mxu0 }
 0x113   : > { %v284_v8 = vadd.f32 %v559_v6, %v283_v7 }
 0x114   : > { %v587_v9 = vpop.f32.mrf.mxu0 }
 0x115   : > { %288 = vrot.lane.b32.xlu0 %v284_v8, %s795_s17 }
 0x187   : > { %v289_v10 = vpop.permute.xlu0 %288 }
 0x188   : > { %589 = vmatpush3.xpose.msk.msra.mxu1 %vm290_vm2, %v289_v10 }
 0x189   : > { %593 = vmatprep.subr.mxu1 %v793_v0 }
 0x18b   : > { %591 = vmatmul.mubr.msk.f32.vlgmr.msra.gmra.mxu1 %vm290_vm2, %v284_v8 }
 0x18c   : > { %595 = vmatprep.mubr.msk.f32.mxu1 %vm794_vm0, %v793_v0 }
 0x24b   : > { %v361_v11 = vpop.f32.mrf.mxu1 }
 0x24c   : > { %v365_v12 = vmul.f32 0.25, %v361_v11 }
 0x24d   : > { %v592_v13 = vpop.f32.mrf.mxu1 }
 0x24e   : > { %v367_v14 = vsel %vm366_vm3, %v365_v12, -inf }
 0x24f   : > { %368 = vmax.xlane.f32.xlu0 %v367_v14 }
 0x2d8   : > { %v369_v15 = vpop.xlane.xlu0 %368 }
 0x2d9   : > { %v370_v16 = vsub.f32 %v365_v12, %v369_v15 }
 0x2db   : > { %v371_v17 = vmul.f32 1.442695, %v370_v16 }
 0x2dd   : > { %661 = vpow2.f32 %v371_v17 }
 0x2ea   : > { %v662_v18 = vpop.eup %661 }
 0x2eb   : > { %v373_v19 = vsel %vm366_vm3, %v662_v18, 0.0 }
 0x2ec   : > { %374 = vadd.xlane.f32.xlu1 %v373_v19 }
 0x2fd   : > { %378 = vrot.lane.b32.xlu1 %v284_v8, %s796_s22 }
 0x375   : > { %v375_v20 = vpop.xlane.xlu1 %374 }
 0x376   : > { %663 = vrcp.f32 %v375_v20 }
 0x379   : > { %v379_v21 = vpop.permute.xlu1 %378 }
 0x37a   : > { %594 = vmatpush3.msra.mxu1 %v379_v21 }
 0x383   : > { %v664_v22 = vpop.eup %663 }
 0x384   : > { %v377_v23 = vmul.f32 %v664_v22, %v662_v18 }
 0x386   : > { %596 = vmatmul.mubr.msk.f32.vlgmr.msra.gmra.mxu1 %vm366_vm3, %v377_v23 }
 0x446   : > { %v450_v24 = vpop.f32.mrf.mxu1 }
 0x447   : > { %454 = vst.msk [vmem:[%s200_s25] sm:$0xff] %vm290_vm2, %v450_v24 }
 0x448   : > { %v597_v25 = vpop.f32.mrf.mxu1 }
 0x449   : > { %732 = shalt.err (!%p729_p0)
}
 0x44a   : > { %s733_s21 = scalar_lea.hbm %s956_s4, 128  ;;  %s737_s27 = scalar_lea.hbm %s1003_s3, 256 }
 0x44b   : > { %p734_p5 = scmp.ne.s32.totalorder %s956_s4, %s733_s21  ;;  %p738_p1 = scmp.lt.s32.totalorder %s956_s4, %s1003_s3 }
 0x44c   : > { %p739_p4 = scmp.lt.s32.totalorder %s737_s27, %s733_s21 }
 0x44d   : > { %p735_p9 = pnand %p734_p5, %p1019_p3 }
 0x44e   : > { %p740_p6 = por %p739_p4, %p738_p1 }
 0x44f   : > { %p736_p12 = pneg %p735_p9 }
 0x451   : > { %p741_p8 = pnand %p740_p6, %p736_p12 }
 0x453   : > { %744 = shalt.err (!%p741_p8)
}
 0x454   : > { %604 = dma.vmem_to_hbm [thread:$0]  (%p1019_p3), %s958_s28, 128, %s956_s4, %s456_s8  }
 0x455 PF: > { %s481_s17 = sand.u32 1, %s775_s12   ;;  %p1020_p11 = scmp.ne.s32.totalorder %s1009_s19, 0 }
 0x456   : > { %p1021_p7 = scmp.ge.s32.totalorder %s787_s15, 2  ;;  %s482_s22 = scalar_lea.sflag [#allocation4], %s481_s17 }
 0x458   : > { %p615_p10 = pnand %p1021_p7, %p1020_p11 }
 0x45a   : > { %p616_p2 = pneg %p615_p10 }
 0x45c   : > { %770 = dma.done.wait (%p616_p2), %s482_s22, 128  }
 0x45d   : > { %772 = vsyncadd (%p616_p2), %s482_s22, 4294967168  ;;  %p17_p13 = scmp.ge.s32.totalorder %s872_s24, 4   ;;  %s1022_s12 = smov %s779_s13 }
 0x45e   : > { %s1023_s13 = smov %s783_s14  ;;  %s1024_s14 = smov %s889_s5 }
 0x45f   : > { %s1025_s15 = smov %s872_s24  ;;  %19 = sbr.rel (!%p17_p13) target bundleno = 6 (0x6), region = 81 }
 0x464   :  { %487 = vsyncpa [#allocation3], 1 }
 0x465   :  { %489 = vsyncpa [#allocation3 + $0x1], 1 }
 0x466   :  { %490 = vsyncpa [#allocation6], 1 }
 0x467   :  { %491 = vsyncpa [#allocation4], 1 }
 0x468   :  { %493 = vsyncpa [#allocation4 + $0x1], 1 }

</bundles_post_ra>
